<compile_context>
chip_gen: v6e
topology: v6e:2x2x1
jax: 0.10.0
libtpu: 0.0.40
codegen_flags: <defaults>
</compile_context>

<pallas_src>
import math

import jax
import jax.numpy as jnp
from jax.experimental import pallas as pl
from jax.experimental.pallas import tpu as pltpu


def _round_up(x, m):
    return (x + m - 1) // m * m


def _cdiv(a, b):
    return (a + b - 1) // b


def _vmem_capacity_bytes():
    """Physical VMEM per TensorCore; conservative 64 MiB fallback (v7x)."""
    try:
        info = pltpu.get_tpu_info()
        for name in ("vmem_capacity_bytes", "vmem_bytes", "vmem_size_bytes"):
            v = getattr(info, name, None)
            if v:
                return int(v)
    except Exception:
        pass
    return 64 * 1024 * 1024


# ---------------------------------------------------------------------------
# Kernels
# ---------------------------------------------------------------------------
def ffn_kernel_resident(x_ref, w1_ref, b1_ref, w2_ref, b2_ref, o_ref):
    """K = 1: full weight matrices are VMEM-resident (grid-constant blocks)."""
    x = x_ref[...].astype(w1_ref.dtype)                       # bf16 operands
    h = jnp.dot(x, w1_ref[...], preferred_element_type=jnp.float32)
    h = jnp.maximum(h + b1_ref[...], 0.0)                     # f32 bias + ReLU
    # TODO(synk): nn.Dropout(p=0.1) is identity in eval mode; training-mode
    # stochastic masking (pltpu.prng_random_bits) intentionally not applied.
    out = jnp.dot(h.astype(w2_ref.dtype), w2_ref[...],
                  preferred_element_type=jnp.float32)
    o_ref[...] = (out + b2_ref[...]).astype(o_ref.dtype)


def ffn_kernel_chunked(x_ref, w1_ref, b1_ref, w2_ref, b2_ref, o_ref, acc_ref):
    """K > 1: hid dimension chunked; f32 accumulator over hid chunks."""
    k = pl.program_id(1)

    @pl.when(k == 0)
    def _():
        acc_ref[...] = jnp.zeros_like(acc_ref)

    x = x_ref[...].astype(w1_ref.dtype)
    h = jnp.dot(x, w1_ref[...], preferred_element_type=jnp.float32)
    h = jnp.maximum(h + b1_ref[...], 0.0)
    # TODO(synk): dropout identity (eval mode), as above.
    acc_ref[...] += jnp.dot(h.astype(w2_ref.dtype), w2_ref[...],
                            preferred_element_type=jnp.float32)

    @pl.when(k == pl.num_programs(1) - 1)
    def _():
        o_ref[...] = (acc_ref[...] + b2_ref[...]).astype(o_ref.dtype)


# ---------------------------------------------------------------------------
# One-time parameter preparation (outside the hot path)
# ---------------------------------------------------------------------------
def prepare_ffn_params(w1, b1, w2, b2, compute_dtype=jnp.bfloat16):
    """Pad feature dims to lane-dense multiples of 128 and cast the weight
    matrices to the MXU compute dtype.  Call ONCE per parameter set.

    w1: (size, hid)  (= layer1.weight.T in PyTorch)
    b1: (hid,) or (1, hid)
    w2: (hid, size)  (= layer2.weight.T)
    b2: (size,) or (1, size)
    """
    size, hid = w1.shape
    size_p = _round_up(size, 128)
    hid_p = _round_up(hid, 128)

    b1 = jnp.asarray(b1).reshape(1, hid).astype(jnp.float32)
    b2 = jnp.asarray(b2).reshape(1, size).astype(jnp.float32)
    if size_p != size or hid_p != hid:
        w1 = jnp.pad(w1, ((0, size_p - size), (0, hid_p - hid)))
        w2 = jnp.pad(w2, ((0, hid_p - hid), (0, size_p - size)))
        b1 = jnp.pad(b1, ((0, 0), (0, hid_p - hid)))
        b2 = jnp.pad(b2, ((0, 0), (0, size_p - size)))
    return (w1.astype(compute_dtype), b1, w2.astype(compute_dtype), b2)


# ---------------------------------------------------------------------------
# Forward pass
# ---------------------------------------------------------------------------
@jax.jit
def positionwise_feedforward(x, w1p, b1p, w2p, b2p):
    """x: (..., size).  w1p/b1p/w2p/b2p from prepare_ffn_params."""
    *lead, size = x.shape
    size_p, hid_p = w1p.shape
    assert w2p.shape == (hid_p, size_p)
    M = math.prod(lead) if lead else 1
    itemsize_w = w1p.dtype.itemsize
    itemsize_x = x.dtype.itemsize

    # ---- generation-aware VMEM budgeting -------------------------------
    cap = _vmem_capacity_bytes()
    vmem_limit = min(int(cap * 0.8), cap - 8 * 1024 * 1024)
    budget = int(cap * 0.6)           # resident tiles must fit under this

    # ---- hid chunk: prefer full hid so W1/W2 stay VMEM-resident (K=1) ---
    def wbytes(th):                   # both weight blocks, double-buffered
        return 2 * 2 * size_p * th * itemsize_w

    if wbytes(hid_p) <= budget // 2:
        th = hid_p
    else:
        th_cap = (budget // 2) // (4 * size_p * itemsize_w)
        th_cap = max(256, th_cap // 256 * 256)
        th = min(th_cap, hid_p)
        while hid_p % th and th > 256:            # prefer 256-granular chunks
            th -= 256
        if hid_p % th:                            # odd multiple of 128: 128 steps
            th = min(th_cap, hid_p)
            while hid_p % th:
                th -= 128
    K = hid_p // th

    # ---- row tile: large, near-divisor of round_up(M, 8), >= 2 tiles ----
    M8 = _round_up(max(M, 1), 8)
    per_row = (2 + 2) * size_p * 4        # x + out tiles, double-buffered f32
    per_row += 4 * th                     # h intermediate (f32)
    if K > 1:
        per_row += 4 * size_p             # f32 accumulator scratch
    rem = max(budget - wbytes(th), 8 * per_row)
    tm_cap = max(8, min(1024, rem // per_row // 8 * 8))
    n_tiles = _cdiv(M8, tm_cap)
    if M8 >= 16:
        n_tiles = max(n_tiles, 2)         # v7x: shard rows across both TCs
    tm = _round_up(_cdiv(M8, n_tiles), 8)
    M_p = n_tiles * tm

    # ---- activations: pad only when needed ------------------------------
    x2d = x.reshape(M, size)
    if M_p != M or size_p != size:
        x2d = jnp.pad(x2d, ((0, M_p - M), (0, size_p - size)))

    # ---- specs / kernel selection ---------------------------------------
    if K == 1:
        grid = (n_tiles,)
        in_specs = [
            pl.BlockSpec((tm, size_p), lambda i: (i, 0)),       # x rows
            pl.BlockSpec((size_p, hid_p), lambda i: (0, 0)),    # W1 (resident)
            pl.BlockSpec((1, hid_p), lambda i: (0, 0)),         # b1
            pl.BlockSpec((hid_p, size_p), lambda i: (0, 0)),    # W2 (resident)
            pl.BlockSpec((1, size_p), lambda i: (0, 0)),        # b2
        ]
        out_specs = pl.BlockSpec((tm, size_p), lambda i: (i, 0))
        scratch = []
        kernel = ffn_kernel_resident
        dims = ("parallel",)
    else:
        grid = (n_tiles, K)
        in_specs = [
            pl.BlockSpec((tm, size_p), lambda i, k: (i, 0)),    # x rows
            pl.BlockSpec((size_p, th), lambda i, k: (0, k)),    # W1 chunk
            pl.BlockSpec((1, th), lambda i, k: (0, k)),         # b1 chunk
            pl.BlockSpec((th, size_p), lambda i, k: (k, 0)),    # W2 chunk
            pl.BlockSpec((1, size_p), lambda i, k: (0, 0)),     # b2
        ]
        out_specs = pl.BlockSpec((tm, size_p), lambda i, k: (i, 0))
        scratch = [pltpu.VMEM((tm, size_p), jnp.float32)]
        kernel = ffn_kernel_chunked
        dims = ("parallel", "arbitrary")

    # ---- advisory cost estimate (actual traffic) -------------------------
    flops = 4 * M_p * size_p * hid_p
    w_streams = 1 if K == 1 else n_tiles
    bytes_accessed = (
        M_p * size_p * itemsize_x                       # x read
        + M_p * size_p * itemsize_x                     # out write
        + w_streams * 2 * size_p * hid_p * itemsize_w   # W1 + W2
        + (hid_p + size_p) * 4                          # biases
    )
    cost = pl.CostEstimate(flops=flops, transcendentals=0,
                           bytes_accessed=bytes_accessed)

    out2d = pl.pallas_call(
        kernel,
        out_shape=jax.ShapeDtypeStruct((M_p, size_p), x.dtype),
        grid_spec=pltpu.PrefetchScalarGridSpec(
            num_scalar_prefetch=0,
            grid=grid,
            in_specs=in_specs,
            out_specs=out_specs,
            scratch_shapes=scratch,
        ),
        compiler_params=pltpu.CompilerParams(
            dimension_semantics=dims,
            vmem_limit_bytes=vmem_limit,
        ),
        cost_estimate=cost,
    )(x2d, w1p, b1p, w2p, b2p)

    out = out2d[:M, :size]
    return out.reshape(*lead, size)


if __name__ == "__main__":
    # Small shapes consistent with the module: size=16, hid_size=64
    batch, seq, size, hid = 2, 8, 16, 64

    key = jax.random.PRNGKey(0)
    kx, kw1, kb1, kw2, kb2 = jax.random.split(key, 5)

    x = jax.random.normal(kx, (batch, seq, size), dtype=jnp.float32)

    # PyTorch layer shapes: layer1.weight (hid, size), layer2.weight (size, hid).
    # Stored transposed for row-major MXU matmuls: w1 (size, hid), w2 (hid, size).
    w1 = jax.random.normal(kw1, (size, hid), dtype=jnp.float32) * 0.05
    b1 = jax.random.normal(kb1, (hid,), dtype=jnp.float32) * 0.05
    w2 = jax.random.normal(kw2, (hid, size), dtype=jnp.float32) * 0.05
    b2 = jax.random.normal(kb2, (size,), dtype=jnp.float32) * 0.05

    # One-time pad + bf16 cast of the parameters (outside the hot path).
    params = prepare_ffn_params(w1, b1, w2, b2)

    out = positionwise_feedforward(x, *params)
    jax.block_until_ready(out)

    # Pure-JAX f32 reference (eval-mode dropout = identity).  bf16 MXU operands
    # introduce ~1e-3 relative drift; tolerance loosened accordingly.
    ref = jnp.maximum(x @ w1 + b1, 0.0) @ w2 + b2
    assert out.shape == ref.shape
    max_err = float(jnp.max(jnp.abs(out - ref)))
    assert jnp.allclose(out, ref, atol=2e-2, rtol=2e-2), (
        f"mismatch vs reference (max abs err {max_err})")

    print("KERNEL_OK")
</pallas_src>

<mosaic_0001>
module attributes {stable_mosaic.version = 11 : i64} {
  func.func @ffn_kernel_resident(%arg0: i32, %arg1: memref<8x128xf32, #tpu.memory_space<vmem>>, %arg2: memref<128x128xbf16, #tpu.memory_space<vmem>>, %arg3: memref<1x128xf32, #tpu.memory_space<vmem>>, %arg4: memref<128x128xbf16, #tpu.memory_space<vmem>>, %arg5: memref<1x128xf32, #tpu.memory_space<vmem>>, %arg6: memref<8x128xf32, #tpu.memory_space<vmem>>) attributes {dimension_semantics = [#tpu.dimension_semantics<parallel>], iteration_bounds = array<i64: 2>, scalar_prefetch = 0 : i64, scratch_operands = 0 : i64, tpu.core_type = #tpu.core_type<tc>, window_params = [{transform_indices = @transform_0, window_bounds = array<i64: 8, 128>}, {pipeline_mode = #tpu.pipeline_mode<synchronous>, transform_indices = @transform_1, window_bounds = array<i64: 128, 128>}, {pipeline_mode = #tpu.pipeline_mode<synchronous>, transform_indices = @transform_2, window_bounds = array<i64: 1, 128>}, {pipeline_mode = #tpu.pipeline_mode<synchronous>, transform_indices = @transform_3, window_bounds = array<i64: 128, 128>}, {pipeline_mode = #tpu.pipeline_mode<synchronous>, transform_indices = @transform_4, window_bounds = array<i64: 1, 128>}, {transform_indices = @transform_5, window_bounds = array<i64: 8, 128>}]} {
    %c0 = arith.constant 0 : index
    %c0_0 = arith.constant 0 : index
    %0 = vector.load %arg1[%c0, %c0_0] : memref<8x128xf32, #tpu.memory_space<vmem>>, vector<8x128xf32>
    %1 = arith.truncf %0 : vector<8x128xf32> to vector<8x128xbf16>
    %c0_1 = arith.constant 0 : index
    %c0_2 = arith.constant 0 : index
    %2 = vector.load %arg2[%c0_1, %c0_2] : memref<128x128xbf16, #tpu.memory_space<vmem>>, vector<128x128xbf16>
    %cst = arith.constant dense<0.000000e+00> : vector<8x128xf32>
    %3 = tpu.matmul %1, %2, %cst {dimension_numbers = #tpu.dot_dimension_numbers<[1], [0], [0], [1], [0, 0, 1, 1], [], []>} : vector<8x128xbf16>, vector<128x128xbf16>, vector<8x128xf32> -> vector<8x128xf32>
    %c0_3 = arith.constant 0 : index
    %c0_4 = arith.constant 0 : index
    %4 = vector.load %arg3[%c0_3, %c0_4] : memref<1x128xf32, #tpu.memory_space<vmem>>, vector<1x128xf32>
    %5 = vector.broadcast %4 : vector<1x128xf32> to vector<8x128xf32>
    %6 = arith.addf %3, %5 : vector<8x128xf32>
    %cst_5 = arith.constant 0.000000e+00 : f32
    %7 = vector.broadcast %cst_5 : f32 to vector<8x128xf32>
    %8 = arith.maximumf %6, %7 : vector<8x128xf32>
    %9 = arith.truncf %8 : vector<8x128xf32> to vector<8x128xbf16>
    %c0_6 = arith.constant 0 : index
    %c0_7 = arith.constant 0 : index
    %10 = vector.load %arg4[%c0_6, %c0_7] : memref<128x128xbf16, #tpu.memory_space<vmem>>, vector<128x128xbf16>
    %cst_8 = arith.constant dense<0.000000e+00> : vector<8x128xf32>
    %11 = tpu.matmul %9, %10, %cst_8 {dimension_numbers = #tpu.dot_dimension_numbers<[1], [0], [0], [1], [0, 0, 1, 1], [], []>} : vector<8x128xbf16>, vector<128x128xbf16>, vector<8x128xf32> -> vector<8x128xf32>
    %c0_9 = arith.constant 0 : index
    %c0_10 = arith.constant 0 : index
    %12 = vector.load %arg5[%c0_9, %c0_10] : memref<1x128xf32, #tpu.memory_space<vmem>>, vector<1x128xf32>
    %13 = vector.broadcast %12 : vector<1x128xf32> to vector<8x128xf32>
    %14 = arith.addf %11, %13 : vector<8x128xf32>
    %c0_11 = arith.constant 0 : index
    %c0_12 = arith.constant 0 : index
    %15 = vector.load %arg6[%c0_11, %c0_12] : memref<8x128xf32, #tpu.memory_space<vmem>>, vector<8x128xf32>
    tpu.vector_store %arg6[%c0_11, %c0_12], %14 {strides = array<i32>} : memref<8x128xf32, #tpu.memory_space<vmem>>, vector<8x128xf32>,
    return
  }
  func.func @transform_0(%arg0: i32) -> (i32, i32) {
    %c0_i32 = arith.constant 0 : i32
    %c0_i32_0 = arith.constant 0 : i32
    return %arg0, %c0_i32 : i32, i32
  }
  func.func @transform_1(%arg0: i32) -> (i32, i32) {
    %c0_i32 = arith.constant 0 : i32
    %c0_i32_0 = arith.constant 0 : i32
    %c0_i32_1 = arith.constant 0 : i32
    return %c0_i32, %c0_i32_0 : i32, i32
  }
  func.func @transform_2(%arg0: i32) -> (i32, i32) {
    %c0_i32 = arith.constant 0 : i32
    %c0_i32_0 = arith.constant 0 : i32
    %c0_i32_1 = arith.constant 0 : i32
    return %c0_i32, %c0_i32_0 : i32, i32
  }
  func.func @transform_3(%arg0: i32) -> (i32, i32) {
    %c0_i32 = arith.constant 0 : i32
    %c0_i32_0 = arith.constant 0 : i32
    %c0_i32_1 = arith.constant 0 : i32
    return %c0_i32, %c0_i32_0 : i32, i32
  }
  func.func @transform_4(%arg0: i32) -> (i32, i32) {
    %c0_i32 = arith.constant 0 : i32
    %c0_i32_0 = arith.constant 0 : i32
    %c0_i32_1 = arith.constant 0 : i32
    return %c0_i32, %c0_i32_0 : i32, i32
  }
  func.func @transform_5(%arg0: i32) -> (i32, i32) {
    %c0_i32 = arith.constant 0 : i32
    %c0_i32_0 = arith.constant 0 : i32
    return %arg0, %c0_i32 : i32, i32
  }
}

</mosaic_0001>

<bundles_post_ra>
// kernel: positionwise_feedforward.1
= control target key start
LH: loop header
LB: loop body
LE: loop exit
PB: predicated region body
PF: predicated region fallthrough
CT: control target
= control target key end

     0   :  { %10 = vsyncpa [#allocation3], 0  ;;  %s870_s0 = inlined_call_operand.vmem [shape: f32[16,128], index: 0, kind: input, shape index: {}]   ;;  %s871_s1 = inlined_call_operand.hbm [shape: bf16[128,128], index: 1, kind: input, shape index: {}]   ;;  %s872_s2 = inlined_call_operand.vmem [shape: f32[1,128], index: 2, kind: input, shape index: {}]   ;;  %s873_s3 = inlined_call_operand.hbm [shape: bf16[128,128], index: 3, kind: input, shape index: {}]   ;;  %s874_s4 = inlined_call_operand.vmem [shape: f32[1,128], index: 4, kind: input, shape index: {}]   ;;  %s875_s5 = inlined_call_operand.vmem [shape: f32[16,128], index: 5, kind: output, shape index: {}]  }
   0x1   :  { %11 = vsyncpa [#allocation5], 0  ;;  %s795_s18 = smov 0  }
   0x2 LB: > { %s801_s19 = sadd.s32 4294967295, %s757_s18   ;;  %p555_p0 = scmp.ge.s32.totalorder %s757_s18, 1  ;;  %s757_s18 = sphi %s795_s18, %s17_s18  }
   0x3   : > { %p158_p1 = scmp.lt.s32.totalorder %s757_s18, 3  ;;  %s759_s20 = smov [#allocation2]  }
   0x4   : > { %s170_s21 = sshll.u32 %s759_s20, 4  ;;  %p657_p3 = scmp.eq.s32.totalorder %s801_s19, 0  ;;  %s171_s21 = int_to_ptr.vmem [resolvable:$true] %s170_s21 }
   0x5   : > { %p805_p2 = pnand %p555_p0, %p158_p1  ;;  %s760_s23 = smov [#allocation4]  }
   0x6   : > { %s186_s24 = sshll.u32 %s760_s23, 4  ;;  %s702_s26 = scalar_lea.vmem %s171_s21, 1024  ;;  %s187_s24 = int_to_ptr.vmem [resolvable:$true] %s186_s24 }
   0x7   : > { %p650_p4 = pneg %p805_p2  ;;  %p703_p7 = scmp.ne.s32.totalorder %s171_s21, %s702_s26 }
   0x8   : > { %p710_p10 = scmp.lt.s32.totalorder %s171_s21, %s171_s21  ;;  %p711_p11 = scmp.lt.s32.totalorder %s702_s26, %s702_s26 }
   0x9   : > { %p814_p5 = pnand %p657_p3, %p650_p4 }
   0xa   : > { %p712_p12 = por %p711_p11, %p710_p10 }
   0xb   : > { %p693_p6 = pneg %p814_p5 }
   0xd   : > { %p705_p8 = pnand %p703_p7, %p693_p6 }
   0xf   : > { %p706_p9 = pneg %p705_p8 }
  0x11   : > { %p713_p13 = pnand %p712_p12, %p706_p9 }
  0x13   : > { %716 = shalt.err (!%p713_p13)
}
  0x14   : > { %s761_s27 = smov 64   ;;  %s762_s28 = smov 4  }
  0x15   : > { %653 = dma.hbm_to_vmem [thread:$0]  (!%p814_p5), %s871_s1, 1024, %s171_s21, [#allocation3], %s761_s27, %s761_s27, %s762_s28  }
  0x16   : > { %s728_s6 = scalar_lea.vmem %s187_s24, 1024  ;;  %p736_p7 = scmp.lt.s32.totalorder %s187_s24, %s187_s24 }
  0x17   : > { %p729_p0 = scmp.ne.s32.totalorder %s187_s24, %s728_s6  ;;  %p737_p8 = scmp.lt.s32.totalorder %s728_s6, %s728_s6 }
  0x19   : > { %p731_p1 = pnand %p729_p0, %p693_p6  ;;  %p738_p10 = por %p737_p8, %p736_p7 }
  0x1b   : > { %p732_p4 = pneg %p731_p1 }
  0x1d   : > { %p739_p9 = pnand %p738_p10, %p732_p4 }
  0x1f   : > { %742 = shalt.err (!%p739_p9)
}
  0x20   : > { %656 = dma.hbm_to_vmem [thread:$0]  (!%p814_p5), %s873_s3, 1024, %s187_s24, [#allocation5], %s761_s27, %s761_s27, %s762_s28  }
  0x21   : > { %212 = sbr.rel (%p805_p2) target bundleno = 473 (0x1d9), region = 40 }
  0x26   : > { %748 = dma.done.wait (%p657_p3), [#allocation3], 1024  }
  0x27   : > { %750 = vsyncadd (%p657_p3), [#allocation3], 4294966272 }
  0x28   : > { %752 = dma.done.wait (%p657_p3), [#allocation5], 1024  }
  0x29   : > { %754 = vsyncadd (%p657_p3), [#allocation5], 4294966272  ;;  %v763_v0 = vmov 0.0   ;;  %vm764_vm0 = vmmov 0   ;;  %v675_v1 = vld [vmem:[#allocation2 + $0x38] sm:$0xff]   ;;  %v676_v2 = vld [vmem:[#allocation2 + $0x30] sm:$0xff]  }
  0x2a   : > { %602 = vmatprep.subr.bf16.mxu0 %v763_v0  ;;  %618 = vmatprep.mubr.msk.bf16.mxu0 %vm764_vm0, %v763_v0  ;;  %v677_v3 = vld [vmem:[#allocation2 + $0x28] sm:$0xff]   ;;  %v683_v4 = vld [vmem:[#allocation4 + $0x38] sm:$0xff]   ;;  %v678_v5 = vld [vmem:[#allocation2 + $0x20] sm:$0xff]   ;;  %p242_p2 = scmp.lt.s32.totalorder %s801_s19, 1 }
  0x2b   : > { %622 = vmatprep.subr.bf16.mxu1 %v763_v0  ;;  %638 = vmatprep.mubr.msk.bf16.mxu1 %vm764_vm0, %v763_v0  ;;  %v684_v6 = vld [vmem:[#allocation4 + $0x30] sm:$0xff]   ;;  %v679_v7 = vld [vmem:[#allocation2 + $0x18] sm:$0xff]   ;;  %v685_v8 = vld [vmem:[#allocation4 + $0x28] sm:$0xff]  }
  0x2c   : > { %603 = vmatpush3.bf16.msra.mxu0 %v675_v1  ;;  %623 = vmatpush3.bf16.msra.mxu1 %v683_v4  ;;  %s879_s19 = smov (!%p242_p2, %s801_s19), 1  ;;  %v680_v9 = vld [vmem:[#allocation2 + $0x10] sm:$0xff]   ;;  %v686_v10 = vld [vmem:[#allocation4 + $0x20] sm:$0xff]   ;;  %v681_v11 = vld [vmem:[#allocation2 + $0x8] sm:$0xff]  }
  0x2d   : > { %604 = vmatprep.subr.bf16.mxu0 %v763_v0  ;;  %624 = vmatprep.subr.bf16.mxu1 %v763_v0  ;;  %s562_s9 = sshll.u32 %s879_s19, 3  ;;  %v687_v12 = vld [vmem:[#allocation4 + $0x18] sm:$0xff]   ;;  %v682_v13 = vld [vmem:[#allocation2] sm:$0xff]   ;;  %v688_v15 = vld [vmem:[#allocation4 + $0x10] sm:$0xff]  }
  0x2e   : > { %s245_s12 = scalar_lea.vmem %s870_s0, %s562_s9  ;;  %v689_v17 = vld [vmem:[#allocation4 + $0x8] sm:$0xff]   ;;  %v690_v18 = vld [vmem:[#allocation4] sm:$0xff]   ;;  %s249_s21 = scalar_lea.vmem %s875_s5, %s562_s9 }
  0x2f   : > { %v251_v14 = vld [vmem:[%s245_s12] sm:$0xff] }
  0x30   : > { %605 = vmatpush3.bf16.msra.mxu0 %v676_v2  ;;  %625 = vmatpush3.bf16.msra.mxu1 %v684_v6  ;;  %v252_v16 = vpack.c.bf16 %v251_v14, %v251_v14  ;;  %v564_v19 = vld [vmem:[%s872_s2] ss:$0 sm:$0xff] }
  0x31   : > { %606 = vmatprep.subr.bf16.mxu0 %v763_v0  ;;  %626 = vmatprep.subr.bf16.mxu1 %v763_v0  ;;  %v573_v27 = vld [vmem:[%s874_s4] ss:$0 sm:$0xff] }
  0x34   : > { %607 = vmatpush3.bf16.msra.mxu0 %v677_v3  ;;  %627 = vmatpush3.bf16.msra.mxu1 %v685_v8 }
  0x35   : > { %608 = vmatprep.subr.bf16.mxu0 %v763_v0  ;;  %628 = vmatprep.subr.bf16.mxu1 %v763_v0 }
  0x38   : > { %609 = vmatpush3.bf16.msra.mxu0 %v678_v5  ;;  %629 = vmatpush3.bf16.msra.mxu1 %v686_v10 }
  0x39   : > { %610 = vmatprep.subr.bf16.mxu0 %v763_v0  ;;  %630 = vmatprep.subr.bf16.mxu1 %v763_v0 }
  0x3c   : > { %611 = vmatpush3.bf16.msra.mxu0 %v679_v7  ;;  %631 = vmatpush3.bf16.msra.mxu1 %v687_v12 }
  0x3d   : > { %612 = vmatprep.subr.bf16.mxu0 %v763_v0  ;;  %632 = vmatprep.subr.bf16.mxu1 %v763_v0 }
  0x40   : > { %613 = vmatpush3.bf16.msra.mxu0 %v680_v9  ;;  %633 = vmatpush3.bf16.msra.mxu1 %v688_v15 }
  0x41   : > { %614 = vmatprep.subr.bf16.mxu0 %v763_v0  ;;  %634 = vmatprep.subr.bf16.mxu1 %v763_v0 }
  0x44   : > { %615 = vmatpush3.bf16.msra.mxu0 %v681_v11  ;;  %635 = vmatpush3.bf16.msra.mxu1 %v689_v17 }
  0x45   : > { %616 = vmatprep.subr.bf16.mxu0 %v763_v0  ;;  %636 = vmatprep.subr.bf16.mxu1 %v763_v0 }
  0x48   : > { %617 = vmatpush3.bf16.msra.mxu0 %v682_v13  ;;  %637 = vmatpush3.bf16.msra.mxu1 %v690_v18 }
  0x4b   : > { %619 = vmatmul.mubr.bf16.vlgmr.msra.gmra.mxu0 %v252_v16 }
 0x10b   : > { %v358_v20 = vpop.f32.mrf.mxu0 }
 0x10c   : > { %v359_v21 = vadd.f32 %v564_v19, %v358_v20 }
 0x10d   : > { %v620_v22 = vpop.f32.mrf.mxu0 }
 0x10e   : > { %v364_v23 = vmax.f32 %v359_v21, 0.0 }
 0x10f   : > { %v361_v24 = vpop.f32.mrf.mxu0 }
 0x110   : > { %v365_v25 = vpack.c.bf16 %v364_v23, %v364_v23 }
 0x111   : > { %v621_v26 = vpop.f32.mrf.mxu0 }
 0x112   : > { %639 = vmatmul.mubr.bf16.vlgmr.msra.gmra.mxu1 %v365_v25 }
 0x1d2   : > { %v471_v28 = vpop.f32.mrf.mxu1 }
 0x1d3   : > { %v472_v29 = vadd.f32 %v573_v27, %v471_v28 }
 0x1d4   : > { %v640_v30 = vpop.f32.mrf.mxu1 }
 0x1d5   : > { %477 = vst [vmem:[%s249_s21] sm:$0xff] %v472_v29 }
 0x1d6   : > { %v474_v31 = vpop.f32.mrf.mxu1 }
 0x1d8   : > { %v641_v32 = vpop.f32.mrf.mxu1 }
 0x1d9 PF: > { %s17_s18 = sadd.s32 1, %s757_s18  }
 0x1da   : > { %p14_p3 = scmp.ge.s32.totalorder %s17_s18, 4  }
 0x1dc   :  { %16 = sbr.rel (!%p14_p3) target bundleno = 2 (0x2), region = 79 }
 0x1e1   :  { %497 = vsyncpa [#allocation3], 1 }
 0x1e2   :  { %499 = vsyncpa [#allocation3 + $0x1], 1 }
 0x1e3   :  { %500 = vsyncpa [#allocation5], 1 }

</bundles_post_ra>
